<compile_context>
chip_gen: v7x
topology: tpu7x:2x2x1
jax: 0.10.0
libtpu: 0.0.40
codegen_flags: <defaults>
</compile_context>

<pallas_src>
import functools

import jax
import jax.numpy as jnp
from jax.experimental import pallas as pl
from jax.experimental.pallas import tpu as pltpu

LN_EPS = 1e-12


def _bert_output_kernel(h_ref, res_ref, w_ref, b_ref, g_ref, beta_ref, o_ref,
                        *, mxu_dtype):
    h = h_ref[...]
    if mxu_dtype is not None and h.dtype != mxu_dtype:
        h = h.astype(mxu_dtype)                       # tile-local VPU cast only
    # Weight is already in the MXU dtype (cast once in the wrapper, resident).
    x = jnp.dot(h, w_ref[...], preferred_element_type=jnp.float32)
    x = x + b_ref[...].astype(jnp.float32)            # bias, broadcast over rows
    x = x + res_ref[...].astype(jnp.float32)          # residual add

    # LayerNorm over the hidden axis — matches MedicalBertLayerNorm:
    # biased variance, (x - u) * rsqrt(var + eps), then affine. Two-pass form
    # kept for f32 stability with eps=1e-12.
    u = jnp.mean(x, axis=-1, keepdims=True)
    s = x - u
    var = jnp.mean(s * s, axis=-1, keepdims=True)
    inv = jax.lax.rsqrt(var + LN_EPS)                 # per-row rsqrt -> EUP
    xn = s * inv                                      # cheap VPU broadcast mul
    o_ref[...] = (g_ref[...].astype(jnp.float32) * xn
                  + beta_ref[...].astype(jnp.float32)).astype(o_ref.dtype)


def _round_up(x, m):
    return (x + m - 1) // m * m


def _vmem_capacity_bytes():
    """Physical VMEM per TensorCore; conservative fallback (v7x) if unknown."""
    try:
        return int(pltpu.get_tpu_info().vmem_capacity_bytes)
    except Exception:
        return 64 << 20


def _pick_tm(M, K, N, h_bytes, res_bytes, w_bytes, out_bytes, mxu_bytes,
             budget_bytes, cap=1024):
    """Row-tile size: largest multiple of 128 (<= cap) whose double-buffered
    tiles + resident weight fit the budget. Prefers divisors of M (no padded
    slab copy) and even grid splits (v7x megacore), unless that would shrink
    the tile by more than 2x."""
    resident = K * N * w_bytes + 2 * 3 * N * 4          # weight + LN params
    per_row = (2 * K * h_bytes                           # activation tile x2 bufs
               + 2 * N * res_bytes                       # residual tile x2 bufs
               + 2 * N * out_bytes                       # output tile x2 bufs
               + K * mxu_bytes                           # in-kernel cast copy
               + N * 4)                                  # f32 epilogue temp
    avail = max(budget_bytes - resident, per_row * 128)
    fit = int(min(cap, avail // per_row))
    if M <= max(fit, 8):
        return _round_up(M, 8)                           # single tile covers M
    tm_max = max(128, (fit // 128) * 128)
    cands = list(range(tm_max, 127, -128))
    divs = [t for t in cands if M % t == 0]
    if divs:
        best = divs[0]
        g = M // best
        if g % 2 == 1 and g > 1:                         # bias to even grid split
            for t in divs:
                if (M // t) % 2 == 0 and 2 * t >= best:
                    best = t
                    break
        if 2 * best >= tm_max:                           # don't over-shrink to avoid pad
            return best
    return tm_max


def medical_bert_output(hidden_states, input_tensor, w, b, gamma, beta,
                        *, mxu_dtype=jnp.bfloat16, tm=None):
    """hidden_states: (B, S, intermediate), input_tensor: (B, S, hidden).
    w: (intermediate, hidden)  (torch Linear weight transposed)
    b, gamma, beta: (hidden,)
    mxu_dtype: dtype fed to the MXU (f32 accumulation); None = use input dtypes.
    """
    B, S, K = hidden_states.shape
    N = input_tensor.shape[-1]
    assert w.shape == (K, N)
    M = B * S
    out_dtype = input_tensor.dtype

    # One-time weight cast (resident operand): halves VMEM footprint + HBM DMA.
    if mxu_dtype is not None and w.dtype != mxu_dtype:
        w = w.astype(mxu_dtype)

    h_bytes = jnp.dtype(hidden_states.dtype).itemsize
    res_bytes = jnp.dtype(input_tensor.dtype).itemsize
    w_bytes = jnp.dtype(w.dtype).itemsize
    out_bytes = jnp.dtype(out_dtype).itemsize
    mxu_bytes = jnp.dtype(mxu_dtype).itemsize if mxu_dtype is not None else h_bytes

    capacity = _vmem_capacity_bytes()
    # Generation-aware tile budget: ~70% of physical VMEM, capped at 96 MiB
    # (v5e/v6e), floored at 24 MiB (v7x worst case).
    budget = max(24 << 20, min(int(capacity * 0.7), 96 << 20))

    if tm is None:
        tm = _pick_tm(M, K, N, h_bytes, res_bytes, w_bytes, out_bytes,
                      mxu_bytes, budget)
    tm = max(8, (int(tm) // 8) * 8)
    tm = min(tm, _round_up(M, 8))

    grid_m = pl.cdiv(M, tm)
    m_pad = grid_m * tm

    h2 = hidden_states.reshape(M, K)
    r2 = input_tensor.reshape(M, N)
    if m_pad != M:
        # Fallback only; _pick_tm biases toward divisors of M to avoid this copy.
        h2 = jnp.pad(h2, ((0, m_pad - M), (0, 0)))
        r2 = jnp.pad(r2, ((0, m_pad - M), (0, 0)))

    b2 = b.reshape(1, N)
    g2 = gamma.reshape(1, N)
    beta2 = beta.reshape(1, N)

    # VMEM: double-buffered tiles + resident weight/params + in-kernel temps.
    vmem_needed = (2 * tm * K * h_bytes
                   + 2 * tm * N * res_bytes
                   + 2 * tm * N * out_bytes
                   + tm * K * mxu_bytes
                   + tm * N * 4
                   + K * N * w_bytes
                   + 2 * 3 * N * 4)
    # Never exceed physical VMEM (v7x: 64 MiB per TensorCore) minus headroom.
    vmem_limit = int(max(16 << 20,
                         min(vmem_needed + (8 << 20), capacity - (4 << 20))))

    cost = pl.CostEstimate(
        flops=2 * m_pad * K * N,
        transcendentals=m_pad,
        bytes_accessed=(m_pad * K * h_bytes + m_pad * N * res_bytes
                        + K * N * w_bytes + 3 * N * 4 + m_pad * N * out_bytes),
    )

    kernel = functools.partial(_bert_output_kernel, mxu_dtype=mxu_dtype)

    out = pl.pallas_call(
        kernel,
        out_shape=jax.ShapeDtypeStruct((m_pad, N), out_dtype),
        grid=(grid_m,),
        in_specs=[
            pl.BlockSpec((tm, K), lambda i: (i, 0)),   # activation tile (pipelined)
            pl.BlockSpec((tm, N), lambda i: (i, 0)),   # residual tile (pipelined)
            pl.BlockSpec((K, N), lambda i: (0, 0)),    # weight (resident, mxu dtype)
            pl.BlockSpec((1, N), lambda i: (0, 0)),    # bias
            pl.BlockSpec((1, N), lambda i: (0, 0)),    # LN gamma
            pl.BlockSpec((1, N), lambda i: (0, 0)),    # LN beta
        ],
        out_specs=pl.BlockSpec((tm, N), lambda i: (i, 0)),
        compiler_params=pltpu.CompilerParams(
            dimension_semantics=("parallel",),         # megacore split on v7x
            vmem_limit_bytes=vmem_limit,
        ),
        cost_estimate=cost,
    )(h2, r2, w, b2, g2, beta2)

    if m_pad != M:
        out = out[:M]
    return out.reshape(B, S, N)


if __name__ == "__main__":
    # Small config: batch=2, seq=8, hidden=32, intermediate=64
    B, S, H, I = 2, 8, 32, 64

    key = jax.random.PRNGKey(0)
    k1, k2, k3, k4 = jax.random.split(key, 4)

    hidden_states = jax.random.normal(k1, (B, S, I), dtype=jnp.float32)
    input_tensor = jax.random.normal(k2, (B, S, H), dtype=jnp.float32)

    # Deterministic parameter init (synthetic, not a checkpoint load).
    w = jax.random.normal(k3, (I, H), dtype=jnp.float32) * 0.02   # dense.weight.T
    b = jax.random.normal(k4, (H,), dtype=jnp.float32) * 0.02     # dense.bias
    gamma = jnp.ones((H,), dtype=jnp.float32)                     # LayerNorm.weight
    beta = jnp.zeros((H,), dtype=jnp.float32)                     # LayerNorm.bias

    # Pure-JAX f32 reference of the same math.
    x = hidden_states @ w + b + input_tensor
    u = x.mean(-1, keepdims=True)
    s = x - u
    var = (s * s).mean(-1, keepdims=True)
    ref = gamma * (s / jnp.sqrt(var + LN_EPS)) + beta

    # Default (performance) path: bf16 MXU operands, f32 accumulation/epilogue.
    out = medical_bert_output(hidden_states, input_tensor, w, b, gamma, beta)
    out = jax.block_until_ready(out)
    assert jnp.allclose(out, ref, atol=2e-2, rtol=2e-2), \
        "mismatch vs reference (bf16 MXU path)"

    # Exact-f32 path: tight check against the reference.
    out_f32 = medical_bert_output(hidden_states, input_tensor, w, b, gamma, beta,
                                  mxu_dtype=None)
    out_f32 = jax.block_until_ready(out_f32)
    assert jnp.allclose(out_f32, ref, atol=1e-5, rtol=1e-5), \
        "mismatch vs reference (f32 path)"

    print("KERNEL_OK")
</pallas_src>

<mosaic_0001>
module attributes {stable_mosaic.version = 11 : i64} {
  func.func @_bert_output_kernel(%arg0: i32, %arg1: memref<16x64xf32, #tpu.memory_space<vmem>>, %arg2: memref<16x32xf32, #tpu.memory_space<vmem>>, %arg3: memref<64x32xbf16, #tpu.memory_space<vmem>>, %arg4: memref<1x32xf32, #tpu.memory_space<vmem>>, %arg5: memref<1x32xf32, #tpu.memory_space<vmem>>, %arg6: memref<1x32xf32, #tpu.memory_space<vmem>>, %arg7: memref<16x32xf32, #tpu.memory_space<vmem>>) attributes {dimension_semantics = [#tpu.dimension_semantics<parallel>], iteration_bounds = array<i64: 1>, scalar_prefetch = 0 : i64, scratch_operands = 0 : i64, tpu.core_type = #tpu.core_type<tc>, window_params = [{transform_indices = @transform_0, window_bounds = array<i64: 16, 64>}, {transform_indices = @transform_1, window_bounds = array<i64: 16, 32>}, {pipeline_mode = #tpu.pipeline_mode<synchronous>, transform_indices = @transform_2, window_bounds = array<i64: 64, 32>}, {pipeline_mode = #tpu.pipeline_mode<synchronous>, transform_indices = @transform_3, window_bounds = array<i64: 1, 32>}, {pipeline_mode = #tpu.pipeline_mode<synchronous>, transform_indices = @transform_4, window_bounds = array<i64: 1, 32>}, {pipeline_mode = #tpu.pipeline_mode<synchronous>, transform_indices = @transform_5, window_bounds = array<i64: 1, 32>}, {transform_indices = @transform_6, window_bounds = array<i64: 16, 32>}]} {
    %c0 = arith.constant 0 : index
    %c0_0 = arith.constant 0 : index
    %0 = vector.load %arg1[%c0, %c0_0] : memref<16x64xf32, #tpu.memory_space<vmem>>, vector<16x64xf32>
    %1 = arith.truncf %0 : vector<16x64xf32> to vector<16x64xbf16>
    %c0_1 = arith.constant 0 : index
    %c0_2 = arith.constant 0 : index
    %2 = vector.load %arg3[%c0_1, %c0_2] : memref<64x32xbf16, #tpu.memory_space<vmem>>, vector<64x32xbf16>
    %cst = arith.constant dense<0.000000e+00> : vector<16x32xf32>
    %3 = tpu.matmul %1, %2, %cst {dimension_numbers = #tpu.dot_dimension_numbers<[1], [0], [0], [1], [0, 0, 1, 1], [], []>} : vector<16x64xbf16>, vector<64x32xbf16>, vector<16x32xf32> -> vector<16x32xf32>
    %c0_3 = arith.constant 0 : index
    %c0_4 = arith.constant 0 : index
    %4 = vector.load %arg4[%c0_3, %c0_4] : memref<1x32xf32, #tpu.memory_space<vmem>>, vector<1x32xf32>
    %5 = vector.broadcast %4 : vector<1x32xf32> to vector<16x32xf32>
    %6 = arith.addf %3, %5 : vector<16x32xf32>
    %c0_5 = arith.constant 0 : index
    %c0_6 = arith.constant 0 : index
    %7 = vector.load %arg2[%c0_5, %c0_6] : memref<16x32xf32, #tpu.memory_space<vmem>>, vector<16x32xf32>
    %8 = arith.addf %6, %7 : vector<16x32xf32>
    %cst_7 = arith.constant dense<0.000000e+00> : vector<16xf32>
    %9 = vector.multi_reduction <add>, %8, %cst_7 [1] : vector<16x32xf32> to vector<16xf32>
    %10 = vector.shape_cast %9 : vector<16xf32> to vector<16x1xf32>
    %cst_8 = arith.constant 3.200000e+01 : f32
    %11 = vector.broadcast %cst_8 : f32 to vector<16x1xf32>
    %12 = arith.divf %10, %11 : vector<16x1xf32>
    %13 = vector.broadcast %12 : vector<16x1xf32> to vector<16x32xf32>
    %14 = arith.subf %8, %13 : vector<16x32xf32>
    %15 = arith.mulf %14, %14 : vector<16x32xf32>
    %cst_9 = arith.constant dense<0.000000e+00> : vector<16xf32>
    %16 = vector.multi_reduction <add>, %15, %cst_9 [1] : vector<16x32xf32> to vector<16xf32>
    %17 = vector.shape_cast %16 : vector<16xf32> to vector<16x1xf32>
    %cst_10 = arith.constant 3.200000e+01 : f32
    %18 = vector.broadcast %cst_10 : f32 to vector<16x1xf32>
    %19 = arith.divf %17, %18 : vector<16x1xf32>
    %cst_11 = arith.constant 9.99999996E-13 : f32
    %20 = vector.broadcast %cst_11 : f32 to vector<16x1xf32>
    %21 = arith.addf %19, %20 : vector<16x1xf32>
    %22 = math.rsqrt %21 : vector<16x1xf32>
    %23 = vector.broadcast %22 : vector<16x1xf32> to vector<16x32xf32>
    %24 = arith.mulf %14, %23 : vector<16x32xf32>
    %c0_12 = arith.constant 0 : index
    %c0_13 = arith.constant 0 : index
    %25 = vector.load %arg5[%c0_12, %c0_13] : memref<1x32xf32, #tpu.memory_space<vmem>>, vector<1x32xf32>
    %26 = vector.broadcast %25 : vector<1x32xf32> to vector<16x32xf32>
    %27 = arith.mulf %26, %24 : vector<16x32xf32>
    %c0_14 = arith.constant 0 : index
    %c0_15 = arith.constant 0 : index
    %28 = vector.load %arg6[%c0_14, %c0_15] : memref<1x32xf32, #tpu.memory_space<vmem>>, vector<1x32xf32>
    %29 = vector.broadcast %28 : vector<1x32xf32> to vector<16x32xf32>
    %30 = arith.addf %27, %29 : vector<16x32xf32>
    %c0_16 = arith.constant 0 : index
    %c0_17 = arith.constant 0 : index
    %31 = vector.load %arg7[%c0_16, %c0_17] : memref<16x32xf32, #tpu.memory_space<vmem>>, vector<16x32xf32>
    tpu.vector_store %arg7[%c0_16, %c0_17], %30 {strides = array<i32>} : memref<16x32xf32, #tpu.memory_space<vmem>>, vector<16x32xf32>,
    return
  }
  func.func @transform_0(%arg0: i32) -> (i32, i32) {
    %c0_i32 = arith.constant 0 : i32
    %c0_i32_0 = arith.constant 0 : i32
    return %arg0, %c0_i32 : i32, i32
  }
  func.func @transform_1(%arg0: i32) -> (i32, i32) {
    %c0_i32 = arith.constant 0 : i32
    %c0_i32_0 = arith.constant 0 : i32
    return %arg0, %c0_i32 : i32, i32
  }
  func.func @transform_2(%arg0: i32) -> (i32, i32) {
    %c0_i32 = arith.constant 0 : i32
    %c0_i32_0 = arith.constant 0 : i32
    %c0_i32_1 = arith.constant 0 : i32
    return %c0_i32, %c0_i32_0 : i32, i32
  }
  func.func @transform_3(%arg0: i32) -> (i32, i32) {
    %c0_i32 = arith.constant 0 : i32
    %c0_i32_0 = arith.constant 0 : i32
    %c0_i32_1 = arith.constant 0 : i32
    return %c0_i32, %c0_i32_0 : i32, i32
  }
  func.func @transform_4(%arg0: i32) -> (i32, i32) {
    %c0_i32 = arith.constant 0 : i32
    %c0_i32_0 = arith.constant 0 : i32
    %c0_i32_1 = arith.constant 0 : i32
    return %c0_i32, %c0_i32_0 : i32, i32
  }
  func.func @transform_5(%arg0: i32) -> (i32, i32) {
    %c0_i32 = arith.constant 0 : i32
    %c0_i32_0 = arith.constant 0 : i32
    %c0_i32_1 = arith.constant 0 : i32
    return %c0_i32, %c0_i32_0 : i32, i32
  }
  func.func @transform_6(%arg0: i32) -> (i32, i32) {
    %c0_i32 = arith.constant 0 : i32
    %c0_i32_0 = arith.constant 0 : i32
    return %arg0, %c0_i32 : i32, i32
  }
}

</mosaic_0001>

<bundles_post_ra>
// kernel: tpu_custom_call.1
= control target key start
LH: loop header
LB: loop body
LE: loop exit
PB: predicated region body
PF: predicated region fallthrough
CT: control target
= control target key end

     0   :  { %v242_v1 = vmov 0.0   ;;  %vm243_vm0 = vmmov 0   ;;  %s333_s0 = inlined_call_operand.vmem [shape: f32[16,64], index: 0, kind: input, shape index: {}]   ;;  %s334_s1 = inlined_call_operand.vmem [shape: f32[16,32], index: 1, kind: input, shape index: {}]   ;;  %s335_s2 = inlined_call_operand.vmem [shape: bf16[64,32], index: 2, kind: input, shape index: {}]   ;;  %s336_s3 = inlined_call_operand.vmem [shape: f32[1,32], index: 3, kind: input, shape index: {}]   ;;  %s337_s4 = inlined_call_operand.vmem [shape: f32[1,32], index: 4, kind: input, shape index: {}]   ;;  %s338_s5 = inlined_call_operand.vmem [shape: f32[1,32], index: 5, kind: input, shape index: {}]   ;;  %s339_s6 = inlined_call_operand.hbm [shape: f32[16,32], index: 6, kind: output, shape index: {}]  }
   0x1   :  { %v210_v0 = vld [vmem:[%s335_s2] sm:$0xff]   ;;  %193 = vmatprep.subr.bf16.mxu0 %v242_v1  ;;  %v211_v2 = vld [vmem:[%s335_s2 + $0x8] sm:$0xff]   ;;  %201 = vmatprep.mubr.msk.bf16.mxu0 %vm243_vm0, %v242_v1 }
   0x2   :  { %194 = vmatpush3.bf16.msra.mxu0 %v210_v0 }
   0x3   :  { %195 = vmatprep.subr.bf16.mxu0 %v242_v1 }
   0x4   :  { %11 = vsyncpa [#allocation3], 0  ;;  %v212_v3 = vld [vmem:[%s335_s2 + $0x10] sm:$0xff]   ;;  %v213_v4 = vld [vmem:[%s335_s2 + $0x18] sm:$0xff]   ;;  %vm67_vm1 = vcmask 523264   ;;  %vm116_vm2 = vcmask 261120  }
   0x5   :  { %v25_v5 = vld [vmem:[%s333_s0] sm:$0xff]  ;;  %v26_v6 = vld [vmem:[%s333_s0 + $0x8] sm:$0xff]  ;;  %s244_s15 = smov [#allocation2]  }
   0x6   :  { %196 = vmatpush3.bf16.msra.mxu0 %v211_v2  ;;  %v27_v7 = vpack.c.bf16 %v26_v6, %v25_v5  ;;  %v180_v8 = vld [vmem:[%s336_s3] ss:$0 sm:$0xff]  ;;  %v113_v14 = vld [vmem:[%s334_s1 + $0x8] sm:$0xff]  ;;  %s169_s16 = sshll.u32 %s244_s15, 4  ;;  %s170_s16 = int_to_ptr.vmem [resolvable:$true] %s169_s16 }
   0x7   :  { %197 = vmatprep.subr.bf16.mxu0 %v242_v1  ;;  %v112_v10 = vld [vmem:[%s334_s1] sm:$0xff]  ;;  %s218_s17 = scalar_lea.vmem %s170_s16, 256  ;;  %p223_p1 = scmp.lt.s32.totalorder %s170_s16, %s170_s16 }
   0x8   :  { %v186_v38 = vld [vmem:[%s337_s4] ss:$0 sm:$0xff]  ;;  %p219_p0 = scmp.ne.s32.totalorder %s170_s16, %s218_s17  ;;  %p224_p2 = scmp.lt.s32.totalorder %s218_s17, %s218_s17 }
   0x9   :  { %v187_v40 = vld [vmem:[%s338_s5] ss:$0 sm:$0xff] }
   0xa   :  { %198 = vmatpush3.bf16.msra.mxu0 %v212_v3  ;;  %p225_p3 = por %p224_p2, %p223_p1 }
   0xb   :  { %199 = vmatprep.subr.bf16.mxu0 %v242_v1 }
   0xc   :  { %p226_p4 = pnand %p225_p3, %p219_p0 }
   0xe   :  { %200 = vmatpush3.bf16.msra.mxu0 %v213_v4 }
  0x11   :  { %202 = vmatmul.mubr.msk.bf16.vlgmr.msra.gmra.mrb[0].mxu0 %vm67_vm1, %v27_v7 }
  0xe4   :  { %v105_v9 = vpop.f32.mrb[0].mxu0 }
  0xe5   :  { %v106_v11 = vadd.f32 %v180_v8, %v105_v9  ;;  %v203_v12 = vpop.f32.mrb[1].mxu0 }
  0xe6   :  { %v108_v13 = vpop.f32.mrb[2].mxu0 }
  0xe7   :  { %v109_v15 = vadd.f32 %v180_v8, %v108_v13  ;;  %v204_v16 = vpop.f32.mrb[3].mxu0  ;;  %v114_v17 = vadd.f32 %v112_v10, %v106_v11 }
  0xe9   :  { %v117_v18 = vsel %vm116_vm2, %v114_v17, 0.0  ;;  %v115_v19 = vadd.f32 %v113_v14, %v109_v15 }
  0xea   :  { %118 = vadd.xlane.f32.xlu0 %v117_v18 }
  0xeb   :  { %v120_v20 = vsel %vm116_vm2, %v115_v19, 0.0 }
  0xee   :  { %121 = vadd.xlane.f32.xlu0 %v120_v20 }
 0x177   :  { %v119_v21 = vpop.xlane.xlu0 %118 }
 0x178   :  { %v124_v22 = vmul.f32 0.03125, %v119_v21 }
 0x17a   :  { %v126_v23 = vsub.f32 %v114_v17, %v124_v22 }
 0x17b   :  { %v122_v24 = vpop.xlane.xlu0 %121 }
 0x17c   :  { %v125_v25 = vmul.f32 0.03125, %v122_v24  ;;  %v128_v26 = vmul.f32 %v126_v23, %v126_v23 }
 0x17e   :  { %v127_v27 = vsub.f32 %v115_v19, %v125_v25  ;;  %v130_v28 = vsel %vm116_vm2, %v128_v26, 0.0 }
 0x17f   :  { %131 = vadd.xlane.f32.xlu1 %v130_v28 }
 0x180   :  { %v129_v29 = vmul.f32 %v127_v27, %v127_v27 }
 0x182   :  { %v133_v30 = vsel %vm116_vm2, %v129_v29, 0.0 }
 0x183   :  { %134 = vadd.xlane.f32.xlu1 %v133_v30 }
 0x20c   :  { %v132_v31 = vpop.xlane.xlu1 %131 }
 0x20d   :  { %v136_v32 = vmul.f32 0.03125, %v132_v31 }
 0x20f   :  { %v138_v33 = vadd.f32 1e-12, %v136_v32 }
 0x210   :  { %v135_v34 = vpop.xlane.xlu1 %134 }
 0x211   :  { %214 = vrsqrt.f32 %v138_v33  ;;  %v137_v35 = vmul.f32 0.03125, %v135_v34 }
 0x213   :  { %v139_v36 = vadd.f32 1e-12, %v137_v35 }
 0x215   :  { %216 = vrsqrt.f32 %v139_v36 }
 0x21b   :  { %v215_v37 = vpop.eup %214 }
 0x21c   :  { %v142_v39 = vmul.f32 %v215_v37, %v126_v23 }
 0x21e   :  { %v151_v41 = vmul.f32 %v186_v38, %v142_v39 }
 0x21f   :  { %v217_v42 = vpop.eup %216 }
 0x220   :  { %v143_v43 = vmul.f32 %v217_v42, %v127_v27  ;;  %v160_v44 = vadd.f32 %v187_v40, %v151_v41 }
 0x222   :  { %v152_v45 = vmul.f32 %v186_v38, %v143_v43  ;;  %162 = vst.msk [vmem:[#allocation2] sm:$0xff] %vm116_vm2, %v160_v44 }
 0x224   :  { %v161_v46 = vadd.f32 %v187_v40, %v152_v45 }
 0x226   :  { %163 = vst.msk [vmem:[#allocation2 + $0x8] sm:$0xff] %vm116_vm2, %v161_v46 }
 0x227   :  { %229 = shalt.err (!%p226_p4)
}
 0x228   :  { %s230_s18 = scalar_lea.hbm %s339_s6, 256 }
 0x229   :  { %p231_p5 = scmp.ne.s32.totalorder %s339_s6, %s230_s18  ;;  %p234_p6 = scmp.lt.u32.totalorder %s230_s18, %s339_s6 }
 0x22b   :  { %p236_p7 = pnand %p234_p6, %p231_p5 }
 0x22d   :  { %239 = shalt.err (!%p236_p7)
}
 0x22e   :  { %s245_s23 = smov 128   ;;  %s246_s24 = smov 8  }
 0x22f   :  { %175 = dma.vmem_to_hbm [thread:$0]  %s170_s16, 256, %s339_s6, [#allocation3], %s245_s23, %s245_s23, %s246_s24  }
 0x230   :  { %240 = dma.done.wait [#allocation3], 256  }
 0x231   :  { %241 = vsyncadd [#allocation3], 4294967040 }
 0x232   :  { %179 = vsyncpa [#allocation3], 1 }

</bundles_post_ra>
